<compile_context>
chip_gen: v5e
topology: v5e:2x2
jax: 0.10.0
libtpu: 0.0.40
codegen_flags: <defaults>
</compile_context>

<pallas_src>
import jax
import jax.numpy as jnp
from jax.experimental import pallas as pl
from jax.experimental.pallas import tpu as pltpu

INPUT_DIM = 7
HIDDEN_DIM = 64
OUTPUT_DIM = 6

# Batch-tile upper bound.  Even at 8192 rows the (tile, 6) f32 in/out blocks
# (192 KiB each, double-buffered) plus the (tile, 64) f32 hidden activations
# (~2 MiB each) stay far under the 32 MiB scoped-VMEM default on v5e/v6e and
# comfortably inside v7x's 64 MiB part.
DEFAULT_TILE_B = 8192


def _round_up(x, m):
    return ((x + m - 1) // m) * m


def _choose_tile(batch, tile_b):
    """Pick the batch tile.

    Aims for >= 2 grid steps whenever the batch allows it (so the "parallel"
    grid axis can be sharded across both TensorCores on v7x), capped at
    `tile_b`.  Block rows are a multiple of 8 (sublane granularity) unless a
    single block covers the whole batch.
    """
    if batch < 16:
        return batch
    half = _round_up((batch + 1) // 2, 8)
    return min(tile_b, half)


def _mlp_kernel(y_ref, w1_ref, b1_ref, w2_ref, b2_ref, w3_ref, b3_ref, o_ref):
    # Batch-major layout: batch rows on the sublane axis, features on lanes.
    # bf16 operands into the MXU (single pass), f32 accumulation, f32
    # bias-add / ReLU.
    y = y_ref[...].astype(jnp.bfloat16)                               # (TB, 6)
    h1 = jnp.dot(y, w1_ref[...], preferred_element_type=jnp.float32)
    h1 = jnp.maximum(h1 + b1_ref[...], 0.0).astype(jnp.bfloat16)      # (TB, 64)
    h2 = jnp.dot(h1, w2_ref[...], preferred_element_type=jnp.float32)
    h2 = jnp.maximum(h2 + b2_ref[...], 0.0).astype(jnp.bfloat16)      # (TB, 64)
    out = jnp.dot(h2, w3_ref[...], preferred_element_type=jnp.float32)
    o_ref[...] = (out + b3_ref[...]).astype(o_ref.dtype)              # (TB, 6)


def nn_correction_forward(t, y, params, tile_b=DEFAULT_TILE_B):
    """Pallas equivalent of NNCorrection.forward(t, y).

    t: scalar (or shape-(1,)) float32 time value.
    y: (B, 6) float32 state.
    returns: (B, 6) float32 correction.
    """
    w1, b1, w2, b2, w3, b3 = params  # w*: (in, out) f32, b*: (1, out) f32
    batch = y.shape[0]
    t_scalar = jnp.reshape(t, ()).astype(jnp.float32)

    # Fold the time feature into layer 1 (never materialize the (B, 7) concat):
    #   [y, t] @ w1 + b1  ==  y @ w1[:6] + (b1 + t * w1[6])
    b1_eff = b1 + t_scalar * w1[6:7, :]          # (1, 64) f32

    # bf16 matmul operands (tiny arrays; one-off cast).
    w1_bf = w1[:6, :].astype(jnp.bfloat16)       # (6, 64)
    w2_bf = w2.astype(jnp.bfloat16)              # (64, 64)
    w3_bf = w3.astype(jnp.bfloat16)              # (64, 6)

    tile = _choose_tile(batch, tile_b)
    grid = (pl.cdiv(batch, tile),)               # ragged last block masked by Pallas

    act_spec = pl.BlockSpec((tile, OUTPUT_DIM), lambda i: (i, 0))
    out_spec = pl.BlockSpec((tile, OUTPUT_DIM), lambda i: (i, 0))
    const = lambda shape: pl.BlockSpec(shape, lambda i: (0, 0))  # VMEM-resident

    param_bytes = (2 * (w1_bf.size + w2_bf.size + w3_bf.size)
                   + 4 * (b1_eff.size + b2.size + b3.size))
    cost = pl.CostEstimate(
        flops=2 * batch * (OUTPUT_DIM * HIDDEN_DIM
                           + HIDDEN_DIM * HIDDEN_DIM
                           + HIDDEN_DIM * OUTPUT_DIM),
        bytes_accessed=batch * (OUTPUT_DIM + OUTPUT_DIM) * 4 + param_bytes,
        transcendentals=0,
    )

    out = pl.pallas_call(
        _mlp_kernel,
        out_shape=jax.ShapeDtypeStruct((batch, OUTPUT_DIM), jnp.float32),
        grid=grid,
        in_specs=[
            act_spec,                                  # y          (B, 6)
            const((OUTPUT_DIM, HIDDEN_DIM)),           # w1[:6]     (6, 64)  bf16
            const((1, HIDDEN_DIM)),                    # b1_eff     (1, 64)  f32
            const((HIDDEN_DIM, HIDDEN_DIM)),           # w2         (64, 64) bf16
            const((1, HIDDEN_DIM)),                    # b2         (1, 64)  f32
            const((HIDDEN_DIM, OUTPUT_DIM)),           # w3         (64, 6)  bf16
            const((1, OUTPUT_DIM)),                    # b3         (1, 6)   f32
        ],
        out_specs=out_spec,
        compiler_params=pltpu.CompilerParams(
            dimension_semantics=("parallel",),
            vmem_limit_bytes=32 * 1024 * 1024,
        ),
        cost_estimate=cost,
    )(y, w1_bf, b1_eff, w2_bf, b2, w3_bf, b3)

    return out                                       # already (B, 6)


def init_params(key):
    """Deterministic init mirroring PyTorch Linear default (uniform +/- 1/sqrt(fan_in)),
    with weights stored as (in, out)."""
    ks = jax.random.split(key, 6)

    def lin(kw, kb, fan_in, fan_out):
        bound = 1.0 / jnp.sqrt(jnp.float32(fan_in))
        w = jax.random.uniform(kw, (fan_in, fan_out), jnp.float32, -bound, bound)
        b = jax.random.uniform(kb, (1, fan_out), jnp.float32, -bound, bound)
        return w, b

    w1, b1 = lin(ks[0], ks[1], INPUT_DIM, HIDDEN_DIM)
    w2, b2 = lin(ks[2], ks[3], HIDDEN_DIM, HIDDEN_DIM)
    w3, b3 = lin(ks[4], ks[5], HIDDEN_DIM, OUTPUT_DIM)
    return (w1, b1, w2, b2, w3, b3)


def reference_forward(t, y, params):
    """Pure-JAX f32 reference matching the PyTorch module exactly."""
    w1, b1, w2, b2, w3, b3 = params
    batch = y.shape[0]
    t_feature = jnp.broadcast_to(jnp.reshape(t, (1, 1)).astype(y.dtype), (batch, 1))
    x = jnp.concatenate([y, t_feature], axis=1)
    h1 = jnp.maximum(x @ w1 + b1, 0.0)
    h2 = jnp.maximum(h1 @ w2 + b2, 0.0)
    return h2 @ w3 + b3


if __name__ == "__main__":
    key = jax.random.PRNGKey(0)
    k_param, k_y, k_t = jax.random.split(key, 3)

    params = init_params(k_param)

    # Tolerances are loosened vs. the pure-f32 version because the matmul
    # operands are bf16 (f32 accumulation); expected error ~1e-3..1e-2 rel.
    ATOL = 5e-2
    RTOL = 5e-2

    # Small batch: single block covering the whole batch.
    B = 8
    y = jax.random.normal(k_y, (B, OUTPUT_DIM), jnp.float32)
    t = jax.random.uniform(k_t, (), jnp.float32)

    out = nn_correction_forward(t, y, params)
    out = jax.block_until_ready(out)
    ref = reference_forward(t, y, params)
    assert out.shape == (B, OUTPUT_DIM), out.shape
    assert jnp.allclose(out, ref, atol=ATOL, rtol=RTOL), \
        float(jnp.max(jnp.abs(out - ref)))

    # Larger batch with a small tile cap: exercises the multi-step grid and the
    # ragged (masked) final block, with no wrapper-side pad or slice.
    B2 = 260
    y2 = jax.random.normal(jax.random.PRNGKey(1), (B2, OUTPUT_DIM), jnp.float32)
    out2 = nn_correction_forward(t, y2, params, tile_b=128)
    out2 = jax.block_until_ready(out2)
    ref2 = reference_forward(t, y2, params)
    assert out2.shape == (B2, OUTPUT_DIM), out2.shape
    assert jnp.allclose(out2, ref2, atol=ATOL, rtol=RTOL), \
        float(jnp.max(jnp.abs(out2 - ref2)))

    print("KERNEL_OK")
</pallas_src>

<mosaic_0001>
module attributes {stable_mosaic.version = 11 : i64} {
  func.func @_mlp_kernel(%arg0: i32, %arg1: memref<8x6xf32, #tpu.memory_space<vmem>>, %arg2: memref<6x64xbf16, #tpu.memory_space<vmem>>, %arg3: memref<1x64xf32, #tpu.memory_space<vmem>>, %arg4: memref<64x64xbf16, #tpu.memory_space<vmem>>, %arg5: memref<1x64xf32, #tpu.memory_space<vmem>>, %arg6: memref<64x6xbf16, #tpu.memory_space<vmem>>, %arg7: memref<1x6xf32, #tpu.memory_space<vmem>>, %arg8: memref<8x6xf32, #tpu.memory_space<vmem>>) attributes {dimension_semantics = [#tpu.dimension_semantics<parallel>], iteration_bounds = array<i64: 1>, scalar_prefetch = 0 : i64, scratch_operands = 0 : i64, tpu.core_type = #tpu.core_type<tc>, window_params = [{transform_indices = @transform_0, window_bounds = array<i64: 8, 6>}, {pipeline_mode = #tpu.pipeline_mode<synchronous>, transform_indices = @transform_1, window_bounds = array<i64: 6, 64>}, {pipeline_mode = #tpu.pipeline_mode<synchronous>, transform_indices = @transform_2, window_bounds = array<i64: 1, 64>}, {pipeline_mode = #tpu.pipeline_mode<synchronous>, transform_indices = @transform_3, window_bounds = array<i64: 64, 64>}, {pipeline_mode = #tpu.pipeline_mode<synchronous>, transform_indices = @transform_4, window_bounds = array<i64: 1, 64>}, {pipeline_mode = #tpu.pipeline_mode<synchronous>, transform_indices = @transform_5, window_bounds = array<i64: 64, 6>}, {pipeline_mode = #tpu.pipeline_mode<synchronous>, transform_indices = @transform_6, window_bounds = array<i64: 1, 6>}, {transform_indices = @transform_7, window_bounds = array<i64: 8, 6>}]} {
    %c0 = arith.constant 0 : index
    %c0_0 = arith.constant 0 : index
    %0 = vector.load %arg1[%c0, %c0_0] : memref<8x6xf32, #tpu.memory_space<vmem>>, vector<8x6xf32>
    %1 = arith.truncf %0 : vector<8x6xf32> to vector<8x6xbf16>
    %c0_1 = arith.constant 0 : index
    %c0_2 = arith.constant 0 : index
    %2 = vector.load %arg2[%c0_1, %c0_2] : memref<6x64xbf16, #tpu.memory_space<vmem>>, vector<6x64xbf16>
    %cst = arith.constant dense<0.000000e+00> : vector<8x64xf32>
    %3 = tpu.matmul %1, %2, %cst {dimension_numbers = #tpu.dot_dimension_numbers<[1], [0], [0], [1], [0, 0, 1, 1], [], []>} : vector<8x6xbf16>, vector<6x64xbf16>, vector<8x64xf32> -> vector<8x64xf32>
    %c0_3 = arith.constant 0 : index
    %c0_4 = arith.constant 0 : index
    %4 = vector.load %arg3[%c0_3, %c0_4] : memref<1x64xf32, #tpu.memory_space<vmem>>, vector<1x64xf32>
    %5 = vector.broadcast %4 : vector<1x64xf32> to vector<8x64xf32>
    %6 = arith.addf %3, %5 : vector<8x64xf32>
    %cst_5 = arith.constant 0.000000e+00 : f32
    %7 = vector.broadcast %cst_5 : f32 to vector<8x64xf32>
    %8 = arith.maximumf %6, %7 : vector<8x64xf32>
    %9 = arith.truncf %8 : vector<8x64xf32> to vector<8x64xbf16>
    %c0_6 = arith.constant 0 : index
    %c0_7 = arith.constant 0 : index
    %10 = vector.load %arg4[%c0_6, %c0_7] : memref<64x64xbf16, #tpu.memory_space<vmem>>, vector<64x64xbf16>
    %cst_8 = arith.constant dense<0.000000e+00> : vector<8x64xf32>
    %11 = tpu.matmul %9, %10, %cst_8 {dimension_numbers = #tpu.dot_dimension_numbers<[1], [0], [0], [1], [0, 0, 1, 1], [], []>} : vector<8x64xbf16>, vector<64x64xbf16>, vector<8x64xf32> -> vector<8x64xf32>
    %c0_9 = arith.constant 0 : index
    %c0_10 = arith.constant 0 : index
    %12 = vector.load %arg5[%c0_9, %c0_10] : memref<1x64xf32, #tpu.memory_space<vmem>>, vector<1x64xf32>
    %13 = vector.broadcast %12 : vector<1x64xf32> to vector<8x64xf32>
    %14 = arith.addf %11, %13 : vector<8x64xf32>
    %cst_11 = arith.constant 0.000000e+00 : f32
    %15 = vector.broadcast %cst_11 : f32 to vector<8x64xf32>
    %16 = arith.maximumf %14, %15 : vector<8x64xf32>
    %17 = arith.truncf %16 : vector<8x64xf32> to vector<8x64xbf16>
    %c0_12 = arith.constant 0 : index
    %c0_13 = arith.constant 0 : index
    %18 = vector.load %arg6[%c0_12, %c0_13] : memref<64x6xbf16, #tpu.memory_space<vmem>>, vector<64x6xbf16>
    %cst_14 = arith.constant dense<0.000000e+00> : vector<8x6xf32>
    %19 = tpu.matmul %17, %18, %cst_14 {dimension_numbers = #tpu.dot_dimension_numbers<[1], [0], [0], [1], [0, 0, 1, 1], [], []>} : vector<8x64xbf16>, vector<64x6xbf16>, vector<8x6xf32> -> vector<8x6xf32>
    %c0_15 = arith.constant 0 : index
    %c0_16 = arith.constant 0 : index
    %20 = vector.load %arg7[%c0_15, %c0_16] : memref<1x6xf32, #tpu.memory_space<vmem>>, vector<1x6xf32>
    %21 = vector.broadcast %20 : vector<1x6xf32> to vector<8x6xf32>
    %22 = arith.addf %19, %21 : vector<8x6xf32>
    %c0_17 = arith.constant 0 : index
    %c0_18 = arith.constant 0 : index
    %23 = vector.load %arg8[%c0_17, %c0_18] : memref<8x6xf32, #tpu.memory_space<vmem>>, vector<8x6xf32>
    tpu.vector_store %arg8[%c0_17, %c0_18], %22 {strides = array<i32>} : memref<8x6xf32, #tpu.memory_space<vmem>>, vector<8x6xf32>,
    return
  }
  func.func @transform_0(%arg0: i32) -> (i32, i32) {
    %c0_i32 = arith.constant 0 : i32
    %c0_i32_0 = arith.constant 0 : i32
    return %arg0, %c0_i32 : i32, i32
  }
  func.func @transform_1(%arg0: i32) -> (i32, i32) {
    %c0_i32 = arith.constant 0 : i32
    %c0_i32_0 = arith.constant 0 : i32
    %c0_i32_1 = arith.constant 0 : i32
    return %c0_i32, %c0_i32_0 : i32, i32
  }
  func.func @transform_2(%arg0: i32) -> (i32, i32) {
    %c0_i32 = arith.constant 0 : i32
    %c0_i32_0 = arith.constant 0 : i32
    %c0_i32_1 = arith.constant 0 : i32
    return %c0_i32, %c0_i32_0 : i32, i32
  }
  func.func @transform_3(%arg0: i32) -> (i32, i32) {
    %c0_i32 = arith.constant 0 : i32
    %c0_i32_0 = arith.constant 0 : i32
    %c0_i32_1 = arith.constant 0 : i32
    return %c0_i32, %c0_i32_0 : i32, i32
  }
  func.func @transform_4(%arg0: i32) -> (i32, i32) {
    %c0_i32 = arith.constant 0 : i32
    %c0_i32_0 = arith.constant 0 : i32
    %c0_i32_1 = arith.constant 0 : i32
    return %c0_i32, %c0_i32_0 : i32, i32
  }
  func.func @transform_5(%arg0: i32) -> (i32, i32) {
    %c0_i32 = arith.constant 0 : i32
    %c0_i32_0 = arith.constant 0 : i32
    %c0_i32_1 = arith.constant 0 : i32
    return %c0_i32, %c0_i32_0 : i32, i32
  }
  func.func @transform_6(%arg0: i32) -> (i32, i32) {
    %c0_i32 = arith.constant 0 : i32
    %c0_i32_0 = arith.constant 0 : i32
    %c0_i32_1 = arith.constant 0 : i32
    return %c0_i32, %c0_i32_0 : i32, i32
  }
  func.func @transform_7(%arg0: i32) -> (i32, i32) {
    %c0_i32 = arith.constant 0 : i32
    %c0_i32_0 = arith.constant 0 : i32
    return %arg0, %c0_i32 : i32, i32
  }
}

</mosaic_0001>

<bundles_post_ra>
// kernel: tpu_custom_call.1
= control target key start
LH: loop header
LB: loop body
LE: loop exit
PB: predicated region body
PF: predicated region fallthrough
CT: control target
= control target key end

     0   :  { %12 = vsyncpa [#allocation3], 0  ;;  %s465_s0 = inlined_call_operand.hbm [shape: f32[8,6], index: 0, kind: input, shape index: {}]   ;;  %s466_s1 = inlined_call_operand.vmem [shape: bf16[6,64], index: 1, kind: input, shape index: {}]   ;;  %s467_s2 = inlined_call_operand.hbm [shape: f32[1,64], index: 2, kind: input, shape index: {}]   ;;  %s468_s3 = inlined_call_operand.vmem [shape: bf16[64,64], index: 3, kind: input, shape index: {}]   ;;  %s469_s4 = inlined_call_operand.hbm [shape: f32[1,64], index: 4, kind: input, shape index: {}]   ;;  %s470_s5 = inlined_call_operand.vmem [shape: bf16[64,6], index: 5, kind: input, shape index: {}]   ;;  %s471_s6 = inlined_call_operand.vmem [shape: f32[1,6], index: 6, kind: input, shape index: {}]   ;;  %s472_s7 = inlined_call_operand.hbm [shape: f32[8,6], index: 7, kind: output, shape index: {}]  }
   0x1   :  { %13 = vsyncpa [#allocation6], 0  ;;  %s33_s26 = sshll.u32 %s467_s2, 4  ;;  %s34_s26 = int_to_ptr.hbm [resolvable:$true] %s33_s26 }
   0x2   :  { %14 = vsyncpa [#allocation4], 0  ;;  %s377_s27 = smov [#allocation5]   ;;  %s20_s8 = sshll.u32 %s465_s0, 4  ;;  %s21_s8 = int_to_ptr.hbm [resolvable:$true] %s20_s8 }
   0x3   :  { %s35_s28 = sshll.u32 %s377_s27, 4  ;;  %s378_s9 = smov [#allocation2]   ;;  %s36_s28 = int_to_ptr.vmem [resolvable:$true] %s35_s28 }
   0x4   :  { %38 = dma.hbm_to_vmem [thread:$0]  %s34_s26, 16, %s36_s28, [#allocation6]  }
   0x5   :  { %s22_s10 = sshll.u32 %s378_s9, 4  ;;  %s46_s13 = sshll.u32 %s469_s4, 4  ;;  %s23_s10 = int_to_ptr.vmem [resolvable:$true] %s22_s10  ;;  %s47_s13 = int_to_ptr.hbm [resolvable:$true] %s46_s13 }
   0x6   :  { %25 = dma.hbm_to_vmem [thread:$0]  %s21_s8, 128, %s23_s10, [#allocation3]  }
   0x7   :  { %s379_s2 = smov [#allocation7]  }
   0x8   :  { %s48_s14 = sshll.u32 %s379_s2, 4  ;;  %s49_s14 = int_to_ptr.vmem [resolvable:$true] %s48_s14 }
   0x9   :  { %51 = dma.hbm_to_vmem [thread:$0]  %s47_s13, 16, %s49_s14, [#allocation6]  }
   0xa   :  { %371 = dma.done.wait [#allocation3], 128  }
   0xb   :  { %372 = vsyncadd [#allocation3], 4294967168 }
   0xc   :  { %373 = dma.done.wait [#allocation6], 32  }
   0xd   :  { %374 = vsyncadd [#allocation6], 4294967264  ;;  %vm80_vm0 = vcmask 1042432   ;;  %v71_v0 = vld [vmem:[%s466_s1] sm:$0x7]  ;;  %v263_v2 = vld [vmem:[%s468_s3 + $0x18] sm:$0xff] }
   0xe   :  { %v69_v1 = vld [vmem:[#allocation2] sm:$0xff]  ;;  %v82_v3 = vsel %vm80_vm0, %v71_v0, 0  ;;  %vm76_vm1 = vcmask 48128   ;;  %143 = vmatpush.bf16.msra.mxu1 %v263_v2  ;;  %v262_v5 = vld [vmem:[%s468_s3 + $0x10] sm:$0xff]  ;;  %v261_v6 = vld [vmem:[%s468_s3 + $0x8] sm:$0xff]  ;;  %vm135_vm2 = vcmask 523264  }
   0xf   :  { %v70_v4 = vpack.c.bf16 %v69_v1, %v69_v1  ;;  %91 = vmatpush.bf16.msra.mxu0 %v82_v3  ;;  %v260_v7 = vld [vmem:[%s468_s3] sm:$0xff]  ;;  %v267_v8 = vld [vmem:[%s470_s5 + $0x18] sm:$0xff]  ;;  %v266_v9 = vld [vmem:[%s470_s5 + $0x10] sm:$0xff]  ;;  %s380_s8 = smov [#allocation8]   ;;  %s214_s12 = sshll.u32 %s472_s7, 4  ;;  %s215_s12 = int_to_ptr.hbm [resolvable:$true] %s214_s12 }
  0x10   :  { %197 = vmatpush.bf16.msra.mxu2 %v267_v8  ;;  %v272_v10 = vld [vmem:[#allocation5] ss:$0 sm:$0xff]  ;;  %v264_v17 = vld [vmem:[%s470_s5] sm:$0xff]  ;;  %v273_v18 = vld [vmem:[#allocation7] ss:$0 sm:$0xff]  ;;  %s212_s9 = sshll.u32 %s380_s8, 4  ;;  %s213_s9 = int_to_ptr.vmem [resolvable:$true] %s212_s9 }
  0x11   :  { %v265_v16 = vld [vmem:[%s470_s5 + $0x8] sm:$0xff]  ;;  %v274_v24 = vld [vmem:[%s471_s6] ss:$0 sm:$0xff] }
  0x12   :  { %225 = vmatmul.msk.bf16.vlgmr.msra.gmra.mxu0 %vm76_vm1, %v70_v4  ;;  %144 = vmatpush.bf16.msra.mxu1 %v262_v5 }
  0x14   :  { %198 = vmatpush.bf16.msra.mxu2 %v266_v9 }
  0x16   :  { %145 = vmatpush.bf16.msra.mxu1 %v261_v6 }
  0x18   :  { %199 = vmatpush.bf16.msra.mxu2 %v265_v16 }
  0x1a   :  { %146 = vmatpush.bf16.msra.mxu1 %v260_v7 }
  0x1c   :  { %200 = vmatpush.bf16.msra.mxu2 %v264_v17 }
  0x8f   :  { %v93_v11 = vpop.f32.mrf.mxu0 }
  0x90   :  { %v94_v12 = vadd.f32 %v272_v10, %v93_v11 }
  0x92   :  { %v97_v13 = vmax.f32 %v94_v12, 0.0 }
  0x94   :  { %v98_v14 = vpack.c.bf16 %v97_v13, %v97_v13 }
  0x96   :  { %242 = vmatmul.msk.bf16.vlgmr.msra.gmra.mxu1 %vm135_vm2, %v98_v14 }
  0x97   :  { %v95_v15 = vpop.f32.mrf.mxu0 }
 0x113   :  { %v148_v19 = vpop.f32.mrf.mxu1 }
 0x114   :  { %v149_v20 = vadd.f32 %v273_v18, %v148_v19 }
 0x116   :  { %v152_v21 = vmax.f32 %v149_v20, 0.0 }
 0x118   :  { %v153_v22 = vpack.c.bf16 %v152_v21, %v152_v21 }
 0x11a   :  { %259 = vmatmul.msk.bf16.vlgmr.msra.gmra.mxu2 %vm135_vm2, %v153_v22 }
 0x11b   :  { %v150_v23 = vpop.f32.mrf.mxu1 }
 0x19d   :  { %v202_v25 = vpop.f32.mrf.mxu2 }
 0x19e   :  { %v203_v26 = vadd.f32 %v274_v24, %v202_v25 }
 0x1a0   :  { %206 = vst.msk [vmem:[#allocation8] sm:$0xff] %vm76_vm1, %v203_v26 }
 0x1a1   :  { %217 = dma.vmem_to_hbm [thread:$0]  %s213_s9, 128, %s215_s12, [#allocation4]  }
 0x1a5   :  { %v204_v27 = vpop.f32.mrf.mxu2 }
 0x1a6   :  { %375 = dma.done.wait [#allocation4], 128  }
 0x1a7   :  { %376 = vsyncadd [#allocation4], 4294967168 }
 0x1a8   :  { %222 = vsyncpa [#allocation3], 1 }
 0x1a9   :  { %223 = vsyncpa [#allocation6], 1 }
 0x1aa   :  { %224 = vsyncpa [#allocation4], 1 }

</bundles_post_ra>
